<compile_context>
chip_gen: v5e
topology: v5e:2x2
jax: 0.10.0
libtpu: 0.0.40
codegen_flags: <defaults>
</compile_context>

<pallas_src>
import jax
import jax.numpy as jnp
from jax.experimental import pallas as pl
from jax.experimental.pallas import tpu as pltpu

LAYER1 = 128
LAYER2 = 128
STATE_SIZE = 4     # CartPole-v1 observation dim
ACTION_SIZE = 2    # CartPole-v1 action dim (actor head)
VALUE_SIZE = 1     # critic head
DROP_P = 0.4

# Fused-network geometry / packed-parameter layout (rows, 256 lanes, f32):
IN_PAD = 8                      # state features padded 4 -> 8 (sublane multiple)
HID = LAYER1 + LAYER2           # 256: actor block [0:128], critic block [128:256]
OUT_PAD = HID                   # lane-dense output slab width
W1_OFF = 0                      # rows [0, 8)    : W1 fused (padded rows are zero)
W2_OFF = W1_OFF + IN_PAD        # rows [8, 264)  : W2 block-diagonal
W3_OFF = W2_OFF + HID           # rows [264, 520): W3 fused heads
BIAS_OFF = W3_OFF + HID         # rows [520, 528): b1, b2, b3, zero padding
PACK_ROWS = BIAS_OFF + 8        # 528 rows total (~540 KiB f32)

DROP_THRESH = int(DROP_P * (1 << 23))      # keep iff bits >= thresh  (P ~= 0.6)
DROP_SCALE = 1.0 / (1.0 - DROP_P)


def _make_ac_kernel(training: bool):
    """Single-program fused actor+critic forward."""

    def kernel(x_ref, p_ref, bits_ref, out_ref):
        x = x_ref[...]                                     # (B, 8)
        w1 = p_ref[W1_OFF:W1_OFF + IN_PAD, :]              # (8, 256)
        w2 = p_ref[W2_OFF:W2_OFF + HID, :]                 # (256, 256) block-diag
        w3 = p_ref[W3_OFF:W3_OFF + HID, :]                 # (256, 256) fused heads
        b1 = p_ref[BIAS_OFF + 0:BIAS_OFF + 1, :]           # (1, 256)
        b2 = p_ref[BIAS_OFF + 1:BIAS_OFF + 2, :]
        b3 = p_ref[BIAS_OFF + 2:BIAS_OFF + 3, :]

        h1 = jnp.maximum(
            jnp.dot(x, w1, preferred_element_type=jnp.float32) + b1, 0.0)
        h2 = jnp.maximum(
            jnp.dot(h1, w2, preferred_element_type=jnp.float32) + b2, 0.0)

        if training:
            # Integer keep-test: bits uniform in [0, 2^23); keep iff >= p*2^23.
            keep = bits_ref[...] >= jnp.int32(DROP_THRESH)
            h2 = jnp.where(keep, h2 * jnp.float32(DROP_SCALE), 0.0)

        out_ref[...] = jnp.dot(h2, w3, preferred_element_type=jnp.float32) + b3

    return kernel


def pack_actor_critic_params(actor_params, critic_params):
    """Pack the 12 per-layer tensors into one (528, 256) f32 buffer."""
    aw1, ab1, aw2, ab2, aw3, ab3 = actor_params
    cw1, cb1, cw2, cb2, cw3, cb3 = critic_params
    p = jnp.zeros((PACK_ROWS, HID), jnp.float32)
    # layer 1: [aw1 | cw1], rows STATE_SIZE..IN_PAD stay zero (x is zero-padded)
    p = p.at[W1_OFF:W1_OFF + STATE_SIZE, 0:LAYER1].set(aw1)
    p = p.at[W1_OFF:W1_OFF + STATE_SIZE, LAYER1:HID].set(cw1)
    # layer 2: block-diagonal (zeros off-diagonal keep actor/critic separated)
    p = p.at[W2_OFF:W2_OFF + LAYER1, 0:LAYER1].set(aw2)
    p = p.at[W2_OFF + LAYER1:W2_OFF + HID, LAYER1:HID].set(cw2)
    # layer 3 heads: actor -> cols [0, ACTION_SIZE), critic -> col ACTION_SIZE
    p = p.at[W3_OFF:W3_OFF + LAYER1, 0:ACTION_SIZE].set(aw3)
    p = p.at[W3_OFF + LAYER1:W3_OFF + HID,
             ACTION_SIZE:ACTION_SIZE + VALUE_SIZE].set(cw3)
    # biases
    p = p.at[BIAS_OFF + 0, 0:LAYER1].set(ab1[0])
    p = p.at[BIAS_OFF + 0, LAYER1:HID].set(cb1[0])
    p = p.at[BIAS_OFF + 1, 0:LAYER1].set(ab2[0])
    p = p.at[BIAS_OFF + 1, LAYER1:HID].set(cb2[0])
    p = p.at[BIAS_OFF + 2, 0:ACTION_SIZE].set(ab3[0])
    p = p.at[BIAS_OFF + 2, ACTION_SIZE:ACTION_SIZE + VALUE_SIZE].set(cb3[0])
    return p


def actor_critic_forward(state, packed_params, dropout_key, training=True):
    """Returns (policy_output (B, ACTION_SIZE), value_output (B, VALUE_SIZE))."""
    B = state.shape[0]
    x_pad = jnp.zeros((B, IN_PAD), jnp.float32)
    x_pad = x_pad.at[:, :STATE_SIZE].set(state.astype(jnp.float32))
    # Fresh dropout bits per call (one (B,256) draw == two independent F.dropout
    # calls on the two 128-wide hidden blocks).
    bits = jax.random.randint(dropout_key, (B, HID), 0, 1 << 23, dtype=jnp.int32)

    out = pl.pallas_call(
        _make_ac_kernel(training),
        out_shape=jax.ShapeDtypeStruct((B, OUT_PAD), jnp.float32),
        in_specs=[
            pl.BlockSpec(memory_space=pltpu.MemorySpace.VMEM),  # x (B, 8)
            pl.BlockSpec(memory_space=pltpu.MemorySpace.VMEM),  # packed params
            pl.BlockSpec(memory_space=pltpu.MemorySpace.VMEM),  # dropout bits
        ],
        out_specs=pl.BlockSpec(memory_space=pltpu.MemorySpace.VMEM),
    )(x_pad, packed_params, bits)

    policy = out[:, :ACTION_SIZE]
    value = out[:, ACTION_SIZE:ACTION_SIZE + VALUE_SIZE]
    return policy, value


def init_linear(key, in_f, out_f):
    # PyTorch nn.Linear default init: U(-1/sqrt(in), 1/sqrt(in)) for W and b.
    kw, kb = jax.random.split(key)
    bound = float(in_f) ** -0.5
    w = jax.random.uniform(kw, (in_f, out_f), jnp.float32, -bound, bound)
    b = jax.random.uniform(kb, (1, out_f), jnp.float32, -bound, bound)
    return w, b


def init_neural_net(key, state_size, action_size):
    k1, k2, k3 = jax.random.split(key, 3)
    w1, b1 = init_linear(k1, state_size, LAYER1)
    w2, b2 = init_linear(k2, LAYER1, LAYER2)
    w3, b3 = init_linear(k3, LAYER2, action_size)
    return (w1, b1, w2, b2, w3, b3)


if __name__ == "__main__":
    key = jax.random.PRNGKey(0)
    k_state, k_actor, k_critic, k_drop = jax.random.split(key, 4)

    B = 8
    state = jax.random.normal(k_state, (B, STATE_SIZE), dtype=jnp.float32)

    actor_params = init_neural_net(k_actor, STATE_SIZE, ACTION_SIZE)
    critic_params = init_neural_net(k_critic, STATE_SIZE, VALUE_SIZE)
    packed = pack_actor_critic_params(actor_params, critic_params)

    # Training-mode forward (F.dropout default training=True, as in the spec).
    policy_out, value_out = actor_critic_forward(state, packed, k_drop,
                                                 training=True)
    jax.block_until_ready((policy_out, value_out))
    assert policy_out.shape == (B, ACTION_SIZE)
    assert value_out.shape == (B, VALUE_SIZE)

    # Eval-mode (deterministic) numeric check against a pure-JAX reference.
    policy_e, value_e = actor_critic_forward(state, packed, k_drop,
                                             training=False)

    def ref_mlp(x, params):
        w1, b1, w2, b2, w3, b3 = params
        h1 = jnp.maximum(x @ w1 + b1, 0.0)
        h2 = jnp.maximum(h1 @ w2 + b2, 0.0)
        return h2 @ w3 + b3

    ref_policy = ref_mlp(state, actor_params)
    ref_value = ref_mlp(state, critic_params)
    jax.block_until_ready((policy_e, value_e, ref_policy, ref_value))
    assert jnp.allclose(policy_e, ref_policy, atol=1e-4, rtol=1e-4)
    assert jnp.allclose(value_e, ref_value, atol=1e-4, rtol=1e-4)

    print("KERNEL_OK")
</pallas_src>

<mosaic_0001>
module attributes {stable_mosaic.version = 11 : i64} {
  func.func @kernel(%arg0: memref<8x8xf32, #tpu.memory_space<vmem>>, %arg1: memref<528x256xf32, #tpu.memory_space<vmem>>, %arg2: memref<8x256xi32, #tpu.memory_space<vmem>>, %arg3: memref<8x256xf32, #tpu.memory_space<vmem>>) attributes {dimension_semantics = [], scalar_prefetch = 0 : i64, scratch_operands = 0 : i64, tpu.core_type = #tpu.core_type<tc>} {
    %c0 = arith.constant 0 : index
    %c0_0 = arith.constant 0 : index
    %0 = vector.load %arg0[%c0, %c0_0] : memref<8x8xf32, #tpu.memory_space<vmem>>, vector<8x8xf32>
    %c0_1 = arith.constant 0 : index
    %c0_2 = arith.constant 0 : index
    %1 = vector.load %arg1[%c0_1, %c0_2] : memref<528x256xf32, #tpu.memory_space<vmem>>, vector<8x256xf32>
    %c8 = arith.constant 8 : index
    %c0_3 = arith.constant 0 : index
    %2 = vector.load %arg1[%c8, %c0_3] : memref<528x256xf32, #tpu.memory_space<vmem>>, vector<256x256xf32>
    %c264 = arith.constant 264 : index
    %c0_4 = arith.constant 0 : index
    %3 = vector.load %arg1[%c264, %c0_4] : memref<528x256xf32, #tpu.memory_space<vmem>>, vector<256x256xf32>
    %c520 = arith.constant 520 : index
    %c0_5 = arith.constant 0 : index
    %4 = vector.load %arg1[%c520, %c0_5] : memref<528x256xf32, #tpu.memory_space<vmem>>, vector<1x256xf32>
    %c521 = arith.constant 521 : index
    %c0_6 = arith.constant 0 : index
    %5 = vector.load %arg1[%c521, %c0_6] : memref<528x256xf32, #tpu.memory_space<vmem>>, vector<1x256xf32>
    %c522 = arith.constant 522 : index
    %c0_7 = arith.constant 0 : index
    %6 = vector.load %arg1[%c522, %c0_7] : memref<528x256xf32, #tpu.memory_space<vmem>>, vector<1x256xf32>
    %cst = arith.constant dense<0.000000e+00> : vector<8x256xf32>
    %7 = tpu.matmul %0, %1, %cst {dimension_numbers = #tpu.dot_dimension_numbers<[1], [0], [0], [1], [0, 0, 1, 1], [], []>} : vector<8x8xf32>, vector<8x256xf32>, vector<8x256xf32> -> vector<8x256xf32>
    %8 = vector.broadcast %4 : vector<1x256xf32> to vector<8x256xf32>
    %9 = arith.addf %7, %8 : vector<8x256xf32>
    %cst_8 = arith.constant 0.000000e+00 : f32
    %10 = vector.broadcast %cst_8 : f32 to vector<8x256xf32>
    %11 = arith.maximumf %9, %10 : vector<8x256xf32>
    %cst_9 = arith.constant dense<0.000000e+00> : vector<8x256xf32>
    %12 = tpu.matmul %11, %2, %cst_9 {dimension_numbers = #tpu.dot_dimension_numbers<[1], [0], [0], [1], [0, 0, 1, 1], [], []>} : vector<8x256xf32>, vector<256x256xf32>, vector<8x256xf32> -> vector<8x256xf32>
    %13 = vector.broadcast %5 : vector<1x256xf32> to vector<8x256xf32>
    %14 = arith.addf %12, %13 : vector<8x256xf32>
    %cst_10 = arith.constant 0.000000e+00 : f32
    %15 = vector.broadcast %cst_10 : f32 to vector<8x256xf32>
    %16 = arith.maximumf %14, %15 : vector<8x256xf32>
    %c0_11 = arith.constant 0 : index
    %c0_12 = arith.constant 0 : index
    %17 = vector.load %arg2[%c0_11, %c0_12] : memref<8x256xi32, #tpu.memory_space<vmem>>, vector<8x256xi32>
    %c3355443_i32 = arith.constant 3355443 : i32
    %18 = vector.broadcast %c3355443_i32 : i32 to vector<8x256xi32>
    %19 = arith.cmpi sge, %17, %18 : vector<8x256xi32>
    %cst_13 = arith.constant 1.66666663 : f32
    %20 = vector.broadcast %cst_13 : f32 to vector<8x256xf32>
    %21 = arith.mulf %16, %20 : vector<8x256xf32>
    %cst_14 = arith.constant 0.000000e+00 : f32
    %22 = vector.broadcast %cst_14 : f32 to vector<8x256xf32>
    %23 = arith.select %19, %21, %22 : vector<8x256xi1>, vector<8x256xf32>
    %cst_15 = arith.constant dense<0.000000e+00> : vector<8x256xf32>
    %24 = tpu.matmul %23, %3, %cst_15 {dimension_numbers = #tpu.dot_dimension_numbers<[1], [0], [0], [1], [0, 0, 1, 1], [], []>} : vector<8x256xf32>, vector<256x256xf32>, vector<8x256xf32> -> vector<8x256xf32>
    %25 = vector.broadcast %6 : vector<1x256xf32> to vector<8x256xf32>
    %26 = arith.addf %24, %25 : vector<8x256xf32>
    %c0_16 = arith.constant 0 : index
    %c0_17 = arith.constant 0 : index
    %27 = vector.load %arg3[%c0_16, %c0_17] : memref<8x256xf32, #tpu.memory_space<vmem>>, vector<8x256xf32>
    tpu.vector_store %arg3[%c0_16, %c0_17], %26 {strides = array<i32>} : memref<8x256xf32, #tpu.memory_space<vmem>>, vector<8x256xf32>,
    return
  }
}

</mosaic_0001>

<bundles_post_ra>
// kernel: tpu_custom_call.1
= control target key start
LH: loop header
LB: loop body
LE: loop exit
PB: predicated region body
PF: predicated region fallthrough
CT: control target
= control target key end

     0   :  { %8 = vsyncpa [#allocation3], 0  ;;  %s598_s0 = inlined_call_operand.hbm [shape: f32[8,8], index: 0, kind: input, shape index: {}]   ;;  %s599_s1 = inlined_call_operand.hbm [shape: f32[528,256], index: 1, kind: input, shape index: {}]   ;;  %s600_s2 = inlined_call_operand.hbm [shape: s32[8,256], index: 2, kind: input, shape index: {}]   ;;  %s601_s3 = inlined_call_operand.hbm [shape: f32[8,256], index: 3, kind: output, shape index: {}]  }
   0x1   :  { %9 = vsyncpa [#allocation6], 0  ;;  %s26_s14 = sshll.u32 %s599_s1, 4  ;;  %s27_s14 = int_to_ptr.hbm [resolvable:$true] %s26_s14 }
   0x2   :  { %10 = vsyncpa [#allocation4], 0  ;;  %s560_s15 = smov [#allocation5]   ;;  %s16_s19 = sshll.u32 %s598_s0, 4  ;;  %s17_s19 = int_to_ptr.hbm [resolvable:$true] %s16_s19 }
   0x3   :  { %s28_s16 = sshll.u32 %s560_s15, 4  ;;  %s561_s20 = smov 256   ;;  %s29_s16 = int_to_ptr.vmem [resolvable:$true] %s28_s16 }
   0x4   :  { %s562_s21 = smov 16   ;;  %s563_s22 = smov [#allocation2]  }
   0x5   :  { %34 = dma.hbm_to_vmem [thread:$0]  %s27_s14, 16896, %s29_s16, [#allocation6], %s561_s20, %s561_s20, %s562_s21  }
   0x6   :  { %s18_s23 = sshll.u32 %s563_s22, 4  ;;  %s40_s26 = sshll.u32 %s600_s2, 4  ;;  %s19_s23 = int_to_ptr.vmem [resolvable:$true] %s18_s23  ;;  %s41_s26 = int_to_ptr.hbm [resolvable:$true] %s40_s26 }
   0x7   :  { %21 = dma.hbm_to_vmem [thread:$0]  %s17_s19, 128, %s19_s23, [#allocation3]  }
   0x8   :  { %s564_s1 = smov [#allocation7]  }
   0x9   :  { %s42_s27 = sshll.u32 %s564_s1, 4  ;;  %s43_s27 = int_to_ptr.vmem [resolvable:$true] %s42_s27 }
   0xa   :  { %45 = dma.hbm_to_vmem [thread:$0]  %s41_s26, 256, %s43_s27, [#allocation6]  }
   0xb   :  { %554 = dma.done.wait [#allocation3], 128  }
   0xc   :  { %555 = vsyncadd [#allocation3], 4294967168 }
   0xd   :  { %556 = dma.done.wait [#allocation6], 17152  }
   0xe   :  { %557 = vsyncadd [#allocation6], 4294950144  ;;  %vm200_vm0 = vcmask 64512   ;;  %v59_v0 = vld [vmem:[#allocation5] sm:$0xff]  ;;  %v58_v1 = vld [vmem:[#allocation2] sm:$0xff]  ;;  %s565_s0 = smov [#allocation8]  }
   0xf   :  { %v60_v2 = vld [vmem:[#allocation5 + $0x8] sm:$0xff]  ;;  %219 = vmatpush.msra.mxu0 %v59_v0  ;;  %v91_v3 = vld [vmem:[#allocation5 + $0x100] sm:$0xff]  ;;  %v89_v5 = vld [vmem:[#allocation5 + $0xf0] sm:$0xff]  ;;  %s433_s2 = sshll.u32 %s565_s0, 4  ;;  %s435_s30 = sshll.u32 %s601_s3, 4  ;;  %s434_s2 = int_to_ptr.vmem [resolvable:$true] %s433_s2  ;;  %s436_s30 = int_to_ptr.hbm [resolvable:$true] %s435_s30 }
  0x10   :  { %239 = vmatpush.msra.mxu1 %v60_v2  ;;  %v92_v4 = vld [vmem:[#allocation5 + $0x108] sm:$0xff]  ;;  %446 = vmatmul.msk.f32.vlgmr.msra.gmra.mxu0 %vm200_vm0, %v58_v1  ;;  %v123_v6 = vld [vmem:[#allocation5 + $0x200] sm:$0xff]  ;;  %v90_v7 = vld [vmem:[#allocation5 + $0xf8] sm:$0xff] }
  0x11   :  { %447 = vmatmul.msk.f32.vlgmr.msra.gmra.mxu1 %vm200_vm0, %v58_v1  ;;  %v124_v8 = vld [vmem:[#allocation5 + $0x208] sm:$0xff]  ;;  %251 = vmatpush.msra.mxu2 %v91_v3  ;;  %v121_v9 = vld [vmem:[#allocation5 + $0x1f0] sm:$0xff]  ;;  %v87_v10 = vld [vmem:[#allocation5 + $0xe0] sm:$0xff] }
  0x12   :  { %291 = vmatpush.msrb.mxu0 %v92_v4  ;;  %271 = vmatpush.msra.mxu3 %v123_v6  ;;  %v88_v11 = vld [vmem:[#allocation5 + $0xe8] sm:$0xff]  ;;  %v122_v12 = vld [vmem:[#allocation5 + $0x1f8] sm:$0xff]  ;;  %v119_v13 = vld [vmem:[#allocation5 + $0x1e0] sm:$0xff] }
  0x13   :  { %311 = vmatpush.msrb.mxu1 %v124_v8  ;;  %252 = vmatpush.msra.mxu2 %v89_v5  ;;  %v120_v14 = vld [vmem:[#allocation5 + $0x1e8] sm:$0xff]  ;;  %v85_v15 = vld [vmem:[#allocation5 + $0xd0] sm:$0xff]  ;;  %v86_v16 = vld [vmem:[#allocation5 + $0xd8] sm:$0xff] }
  0x14   :  { %292 = vmatpush.msrb.mxu0 %v90_v7  ;;  %272 = vmatpush.msra.mxu3 %v121_v9  ;;  %v117_v17 = vld [vmem:[#allocation5 + $0x1d0] sm:$0xff]  ;;  %v118_v18 = vld [vmem:[#allocation5 + $0x1d8] sm:$0xff]  ;;  %v83_v19 = vld [vmem:[#allocation5 + $0xc0] sm:$0xff] }
  0x15   :  { %312 = vmatpush.msrb.mxu1 %v122_v12  ;;  %253 = vmatpush.msra.mxu2 %v87_v10  ;;  %v84_v20 = vld [vmem:[#allocation5 + $0xc8] sm:$0xff]  ;;  %v115_v21 = vld [vmem:[#allocation5 + $0x1c0] sm:$0xff]  ;;  %v81_v23 = vld [vmem:[#allocation5 + $0xb0] sm:$0xff] }
  0x16   :  { %293 = vmatpush.msrb.mxu0 %v88_v11  ;;  %273 = vmatpush.msra.mxu3 %v119_v13  ;;  %v116_v22 = vld [vmem:[#allocation5 + $0x1c8] sm:$0xff]  ;;  %v82_v24 = vld [vmem:[#allocation5 + $0xb8] sm:$0xff]  ;;  %v113_v25 = vld [vmem:[#allocation5 + $0x1b0] sm:$0xff] }
  0x17   :  { %313 = vmatpush.msrb.mxu1 %v120_v14  ;;  %254 = vmatpush.msra.mxu2 %v85_v15  ;;  %v114_v26 = vld [vmem:[#allocation5 + $0x1b8] sm:$0xff]  ;;  %v79_v27 = vld [vmem:[#allocation5 + $0xa0] sm:$0xff]  ;;  %v80_v28 = vld [vmem:[#allocation5 + $0xa8] sm:$0xff] }
  0x18   :  { %294 = vmatpush.msrb.mxu0 %v86_v16  ;;  %274 = vmatpush.msra.mxu3 %v117_v17  ;;  %v111_v29 = vld [vmem:[#allocation5 + $0x1a0] sm:$0xff]  ;;  %v112_v30 = vld [vmem:[#allocation5 + $0x1a8] sm:$0xff]  ;;  %v77_v31 = vld [vmem:[#allocation5 + $0x90] sm:$0xff] }
  0x19   :  { %314 = vmatpush.msrb.mxu1 %v118_v18  ;;  %255 = vmatpush.msra.mxu2 %v83_v19  ;;  %v78_v32 = vld [vmem:[#allocation5 + $0x98] sm:$0xff]  ;;  %v109_v33 = vld [vmem:[#allocation5 + $0x190] sm:$0xff]  ;;  %v75_v35 = vld [vmem:[#allocation5 + $0x80] sm:$0xff] }
  0x1a   :  { %295 = vmatpush.msrb.mxu0 %v84_v20  ;;  %275 = vmatpush.msra.mxu3 %v115_v21  ;;  %v110_v34 = vld [vmem:[#allocation5 + $0x198] sm:$0xff]  ;;  %v76_v36 = vld [vmem:[#allocation5 + $0x88] sm:$0xff]  ;;  %v107_v37 = vld [vmem:[#allocation5 + $0x180] sm:$0xff] }
  0x1b   :  { %315 = vmatpush.msrb.mxu1 %v116_v22  ;;  %256 = vmatpush.msra.mxu2 %v81_v23  ;;  %v108_v38 = vld [vmem:[#allocation5 + $0x188] sm:$0xff]  ;;  %v73_v39 = vld [vmem:[#allocation5 + $0x70] sm:$0xff]  ;;  %v74_v40 = vld [vmem:[#allocation5 + $0x78] sm:$0xff] }
  0x1c   :  { %296 = vmatpush.msrb.mxu0 %v82_v24  ;;  %276 = vmatpush.msra.mxu3 %v113_v25  ;;  %v105_v41 = vld [vmem:[#allocation5 + $0x170] sm:$0xff]  ;;  %v106_v42 = vld [vmem:[#allocation5 + $0x178] sm:$0xff]  ;;  %v71_v43 = vld [vmem:[#allocation5 + $0x60] sm:$0xff] }
  0x1d   :  { %316 = vmatpush.msrb.mxu1 %v114_v26  ;;  %257 = vmatpush.msra.mxu2 %v79_v27  ;;  %v72_v44 = vld [vmem:[#allocation5 + $0x68] sm:$0xff]  ;;  %v103_v45 = vld [vmem:[#allocation5 + $0x160] sm:$0xff]  ;;  %v69_v47 = vld [vmem:[#allocation5 + $0x50] sm:$0xff] }
  0x1e   :  { %297 = vmatpush.msrb.mxu0 %v80_v28  ;;  %277 = vmatpush.msra.mxu3 %v111_v29  ;;  %v104_v46 = vld [vmem:[#allocation5 + $0x168] sm:$0xff]  ;;  %v70_v48 = vld [vmem:[#allocation5 + $0x58] sm:$0xff]  ;;  %v101_v49 = vld [vmem:[#allocation5 + $0x150] sm:$0xff] }
  0x1f   :  { %317 = vmatpush.msrb.mxu1 %v112_v30  ;;  %258 = vmatpush.msra.mxu2 %v77_v31  ;;  %v102_v50 = vld [vmem:[#allocation5 + $0x158] sm:$0xff]  ;;  %v67_v51 = vld [vmem:[#allocation5 + $0x40] sm:$0xff]  ;;  %v68_v52 = vld [vmem:[#allocation5 + $0x48] sm:$0xff] }
  0x20   :  { %298 = vmatpush.msrb.mxu0 %v78_v32  ;;  %278 = vmatpush.msra.mxu3 %v109_v33  ;;  %v65_v53 = vld [vmem:[#allocation5 + $0x30] sm:$0xff]  ;;  %v99_v54 = vld [vmem:[#allocation5 + $0x140] sm:$0xff]  ;;  %v66_v55 = vld [vmem:[#allocation5 + $0x38] sm:$0xff] }
  0x21   :  { %318 = vmatpush.msrb.mxu1 %v110_v34  ;;  %259 = vmatpush.msra.mxu2 %v75_v35  ;;  %v100_v56 = vld [vmem:[#allocation5 + $0x148] sm:$0xff]  ;;  %v63_v57 = vld [vmem:[#allocation5 + $0x20] sm:$0xff]  ;;  %v97_v58 = vld [vmem:[#allocation5 + $0x130] sm:$0xff] }
  0x22   :  { %299 = vmatpush.msrb.mxu0 %v76_v36  ;;  %279 = vmatpush.msra.mxu3 %v107_v37  ;;  %v64_v59 = vld [vmem:[#allocation5 + $0x28] sm:$0xff]  ;;  %v98_v60 = vld [vmem:[#allocation5 + $0x138] sm:$0xff]  ;;  %v61_v61 = vld [vmem:[#allocation5 + $0x10] sm:$0xff] }
  0x23   :  { %319 = vmatpush.msrb.mxu1 %v108_v38  ;;  %260 = vmatpush.msra.mxu2 %v73_v39  ;;  %v95_v62 = vld [vmem:[#allocation5 + $0x120] sm:$0xff]  ;;  %v62_v63 = vld [vmem:[#allocation5 + $0x18] sm:$0xff]  ;;  %v96_v0 = vld [vmem:[#allocation5 + $0x128] sm:$0xff] }
  0x24   :  { %300 = vmatpush.msrb.mxu0 %v74_v40  ;;  %280 = vmatpush.msra.mxu3 %v105_v41  ;;  %v93_v1 = vld [vmem:[#allocation5 + $0x110] sm:$0xff]  ;;  %v94_v2 = vld [vmem:[#allocation5 + $0x118] sm:$0xff]  ;;  %v187_v3 = vld [vmem:[#allocation5 + $0x400] sm:$0xff] }
  0x25   :  { %320 = vmatpush.msrb.mxu1 %v106_v42  ;;  %261 = vmatpush.msra.mxu2 %v71_v43  ;;  %v188_v4 = vld [vmem:[#allocation5 + $0x408] sm:$0xff]  ;;  %v185_v5 = vld [vmem:[#allocation5 + $0x3f0] sm:$0xff]  ;;  %v186_v6 = vld [vmem:[#allocation5 + $0x3f8] sm:$0xff] }
  0x26   :  { %301 = vmatpush.msrb.mxu0 %v72_v44  ;;  %281 = vmatpush.msra.mxu3 %v103_v45  ;;  %v183_v7 = vld [vmem:[#allocation5 + $0x3e0] sm:$0xff]  ;;  %v156_v9 = vld [vmem:[#allocation5 + $0x308] sm:$0xff]  ;;  %v153_v11 = vld [vmem:[#allocation5 + $0x2f0] sm:$0xff] }
  0x27   :  { %321 = vmatpush.msrb.mxu1 %v104_v46  ;;  %262 = vmatpush.msra.mxu2 %v69_v47  ;;  %v155_v8 = vld [vmem:[#allocation5 + $0x300] sm:$0xff]  ;;  %v184_v10 = vld [vmem:[#allocation5 + $0x3e8] sm:$0xff]  ;;  %v181_v12 = vld [vmem:[#allocation5 + $0x3d0] sm:$0xff] }
  0x28   :  { %302 = vmatpush.msrb.mxu0 %v70_v48  ;;  %282 = vmatpush.msra.mxu3 %v101_v49  ;;  %v154_v13 = vld [vmem:[#allocation5 + $0x2f8] sm:$0xff]  ;;  %v151_v14 = vld [vmem:[#allocation5 + $0x2e0] sm:$0xff]  ;;  %v152_v16 = vld [vmem:[#allocation5 + $0x2e8] sm:$0xff] }
  0x29   :  { %322 = vmatpush.msrb.mxu1 %v102_v50  ;;  %263 = vmatpush.msra.mxu2 %v67_v51  ;;  %v182_v15 = vld [vmem:[#allocation5 + $0x3d8] sm:$0xff]  ;;  %v179_v17 = vld [vmem:[#allocation5 + $0x3c0] sm:$0xff]  ;;  %v149_v18 = vld [vmem:[#allocation5 + $0x2d0] sm:$0xff] }
  0x2a   :  { %303 = vmatpush.msrb.mxu0 %v68_v52  ;;  %283 = vmatpush.msra.mxu3 %v99_v54  ;;  %v180_v19 = vld [vmem:[#allocation5 + $0x3c8] sm:$0xff]  ;;  %v150_v20 = vld [vmem:[#allocation5 + $0x2d8] sm:$0xff]  ;;  %v177_v21 = vld [vmem:[#allocation5 + $0x3b0] sm:$0xff] }
  0x2b   :  { %264 = vmatpush.msra.mxu2 %v65_v53  ;;  %323 = vmatpush.msrb.mxu1 %v100_v56  ;;  %v147_v22 = vld [vmem:[#allocation5 + $0x2c0] sm:$0xff]  ;;  %v178_v23 = vld [vmem:[#allocation5 + $0x3b8] sm:$0xff]  ;;  %v148_v24 = vld [vmem:[#allocation5 + $0x2c8] sm:$0xff] }
  0x2c   :  { %304 = vmatpush.msrb.mxu0 %v66_v55  ;;  %284 = vmatpush.msra.mxu3 %v97_v58  ;;  %v175_v25 = vld [vmem:[#allocation5 + $0x3a0] sm:$0xff]  ;;  %v145_v26 = vld [vmem:[#allocation5 + $0x2b0] sm:$0xff]  ;;  %v176_v27 = vld [vmem:[#allocation5 + $0x3a8] sm:$0xff] }
  0x2d   :  { %265 = vmatpush.msra.mxu2 %v63_v57  ;;  %324 = vmatpush.msrb.mxu1 %v98_v60  ;;  %v146_v28 = vld [vmem:[#allocation5 + $0x2b8] sm:$0xff]  ;;  %v173_v29 = vld [vmem:[#allocation5 + $0x390] sm:$0xff]  ;;  %v143_v30 = vld [vmem:[#allocation5 + $0x2a0] sm:$0xff] }
  0x2e   :  { %305 = vmatpush.msrb.mxu0 %v64_v59  ;;  %285 = vmatpush.msra.mxu3 %v95_v62  ;;  %v174_v31 = vld [vmem:[#allocation5 + $0x398] sm:$0xff]  ;;  %v144_v32 = vld [vmem:[#allocation5 + $0x2a8] sm:$0xff]  ;;  %v171_v33 = vld [vmem:[#allocation5 + $0x380] sm:$0xff] }
  0x2f   :  { %266 = vmatpush.msra.mxu2 %v61_v61  ;;  %325 = vmatpush.msrb.mxu1 %v96_v0  ;;  %v141_v34 = vld [vmem:[#allocation5 + $0x290] sm:$0xff]  ;;  %v172_v35 = vld [vmem:[#allocation5 + $0x388] sm:$0xff]  ;;  %v142_v36 = vld [vmem:[#allocation5 + $0x298] sm:$0xff] }
  0x30   :  { %306 = vmatpush.msrb.mxu0 %v62_v63  ;;  %286 = vmatpush.msra.mxu3 %v93_v1  ;;  %v169_v37 = vld [vmem:[#allocation5 + $0x370] sm:$0xff]  ;;  %v170_v38 = vld [vmem:[#allocation5 + $0x378] sm:$0xff]  ;;  %v167_v39 = vld [vmem:[#allocation5 + $0x360] sm:$0xff] }
  0x31   :  { %326 = vmatpush.msrb.mxu1 %v94_v2  ;;  %346 = vmatpush.msrb.mxu2 %v155_v8  ;;  %v168_v40 = vld [vmem:[#allocation5 + $0x368] sm:$0xff]  ;;  %v190_v41 = vld [vmem:[#allocation5 + $0x410] ss:$8 sm:$0x3]  ;;  %v139_v50 = vld [vmem:[#allocation5 + $0x280] sm:$0xff] }
  0x32   :  { %366 = vmatpush.msrb.mxu3 %v187_v3  ;;  %386 = vmatpush.msra.mxu0 %v156_v9  ;;  %v196_v42 = vperm.slane %v190_v41, 0  ;;  %v197_v43 = vperm.slane %v190_v41, 1  ;;  %v165_v51 = vld [vmem:[#allocation5 + $0x350] sm:$0xff]  ;;  %v140_v52 = vld [vmem:[#allocation5 + $0x288] sm:$0xff]  ;;  %v166_v53 = vld [vmem:[#allocation5 + $0x358] sm:$0xff] }
  0x33   :  { %406 = vmatpush.msra.mxu1 %v188_v4  ;;  %347 = vmatpush.msrb.mxu2 %v153_v11  ;;  %v137_v54 = vld [vmem:[#allocation5 + $0x270] sm:$0xff]  ;;  %v163_v55 = vld [vmem:[#allocation5 + $0x340] sm:$0xff]  ;;  %v138_v56 = vld [vmem:[#allocation5 + $0x278] sm:$0xff] }
  0x34   :  { %367 = vmatpush.msrb.mxu3 %v185_v5  ;;  %387 = vmatpush.msra.mxu0 %v154_v13  ;;  %v164_v57 = vld [vmem:[#allocation5 + $0x348] sm:$0xff]  ;;  %v135_v58 = vld [vmem:[#allocation5 + $0x260] sm:$0xff]  ;;  %v161_v59 = vld [vmem:[#allocation5 + $0x330] sm:$0xff] }
  0x35   :  { %407 = vmatpush.msra.mxu1 %v186_v6  ;;  %348 = vmatpush.msrb.mxu2 %v151_v14  ;;  %v136_v60 = vld [vmem:[#allocation5 + $0x268] sm:$0xff]  ;;  %v162_v61 = vld [vmem:[#allocation5 + $0x338] sm:$0xff]  ;;  %v133_v62 = vld [vmem:[#allocation5 + $0x250] sm:$0xff] }
  0x36   :  { %368 = vmatpush.msrb.mxu3 %v183_v7  ;;  %388 = vmatpush.msra.mxu0 %v152_v16  ;;  %v159_v63 = vld [vmem:[#allocation5 + $0x320] sm:$0xff]  ;;  %v134_v0 = vld [vmem:[#allocation5 + $0x258] sm:$0xff]  ;;  %v160_v1 = vld [vmem:[#allocation5 + $0x328] sm:$0xff] }
  0x37   :  { %408 = vmatpush.msra.mxu1 %v184_v10  ;;  %349 = vmatpush.msrb.mxu2 %v149_v18  ;;  %v131_v2 = vld [vmem:[#allocation5 + $0x240] sm:$0xff]  ;;  %v157_v3 = vld [vmem:[#allocation5 + $0x310] sm:$0xff]  ;;  %v132_v4 = vld [vmem:[#allocation5 + $0x248] sm:$0xff] }
  0x38   :  { %369 = vmatpush.msrb.mxu3 %v181_v12  ;;  %389 = vmatpush.msra.mxu0 %v150_v20  ;;  %v158_v5 = vld [vmem:[#allocation5 + $0x318] sm:$0xff]  ;;  %v129_v6 = vld [vmem:[#allocation5 + $0x230] sm:$0xff]  ;;  %v127_v8 = vld [vmem:[#allocation5 + $0x220] sm:$0xff] }
  0x39   :  { %409 = vmatpush.msra.mxu1 %v182_v15  ;;  %350 = vmatpush.msrb.mxu2 %v147_v22  ;;  %v130_v7 = vld [vmem:[#allocation5 + $0x238] sm:$0xff]  ;;  %v128_v9 = vld [vmem:[#allocation5 + $0x228] sm:$0xff]  ;;  %v125_v10 = vld [vmem:[#allocation5 + $0x210] sm:$0xff] }
  0x3a   :  { %370 = vmatpush.msrb.mxu3 %v179_v17  ;;  %390 = vmatpush.msra.mxu0 %v148_v24  ;;  %v126_v11 = vld [vmem:[#allocation5 + $0x218] sm:$0xff] }
  0x3b   :  { %410 = vmatpush.msra.mxu1 %v180_v19  ;;  %351 = vmatpush.msrb.mxu2 %v145_v26  ;;  %v192_v12 = vld [vmem:[#allocation5 + $0x411] ss:$8 sm:$0x3]  ;;  %v334_v19 = vld [vmem:[#allocation7 + $0x8] sm:$0xff]  ;;  %v333_v26 = vld [vmem:[#allocation7] sm:$0xff] }
  0x3c   :  { %371 = vmatpush.msrb.mxu3 %v177_v21  ;;  %391 = vmatpush.msra.mxu0 %v146_v28  ;;  %v248_v13 = vperm.slane %v192_v12, 1  ;;  %v247_v18 = vperm.slane %v192_v12, 0  ;;  %vm336_vm1 = vcmp.ge.s32.totalorder %v334_v19, 3355443  ;;  %vm335_vm2 = vcmp.ge.s32.totalorder %v333_v26, 3355443 }
  0x3d   :  { %411 = vmatpush.msra.mxu1 %v178_v23  ;;  %352 = vmatpush.msrb.mxu2 %v143_v30 }
  0x3e   :  { %372 = vmatpush.msrb.mxu3 %v175_v25  ;;  %392 = vmatpush.msra.mxu0 %v144_v32 }
  0x3f   :  { %412 = vmatpush.msra.mxu1 %v176_v27  ;;  %353 = vmatpush.msrb.mxu2 %v141_v34 }
  0x40   :  { %373 = vmatpush.msrb.mxu3 %v173_v29  ;;  %393 = vmatpush.msra.mxu0 %v142_v36  ;;  %v194_v29 = vld [vmem:[#allocation5 + $0x412] ss:$8 sm:$0x3] }
  0x41   :  { %413 = vmatpush.msra.mxu1 %v174_v31  ;;  %354 = vmatpush.msrb.mxu2 %v139_v50  ;;  %v343_v30 = vperm.slane %v194_v29, 1 }
  0x42   :  { %374 = vmatpush.msrb.mxu3 %v171_v33  ;;  %394 = vmatpush.msra.mxu0 %v140_v52 }
  0x43   :  { %414 = vmatpush.msra.mxu1 %v172_v35  ;;  %355 = vmatpush.msrb.mxu2 %v137_v54  ;;  %v342_v35 = vperm.slane %v194_v29, 0 }
  0x44   :  { %375 = vmatpush.msrb.mxu3 %v169_v37  ;;  %395 = vmatpush.msra.mxu0 %v138_v56 }
  0x45   :  { %415 = vmatpush.msra.mxu1 %v170_v38  ;;  %356 = vmatpush.msrb.mxu2 %v135_v58 }
  0x46   :  { %376 = vmatpush.msrb.mxu3 %v167_v39  ;;  %396 = vmatpush.msra.mxu0 %v136_v60 }
  0x47   :  { %416 = vmatpush.msra.mxu1 %v168_v40  ;;  %357 = vmatpush.msrb.mxu2 %v133_v62 }
  0x48   :  { %377 = vmatpush.msrb.mxu3 %v165_v51  ;;  %397 = vmatpush.msra.mxu0 %v134_v0 }
  0x49   :  { %417 = vmatpush.msra.mxu1 %v166_v53  ;;  %358 = vmatpush.msrb.mxu2 %v131_v2 }
  0x4a   :  { %378 = vmatpush.msrb.mxu3 %v163_v55  ;;  %398 = vmatpush.msra.mxu0 %v132_v4 }
  0x4b   :  { %418 = vmatpush.msra.mxu1 %v164_v57  ;;  %359 = vmatpush.msrb.mxu2 %v129_v6 }
  0x4c   :  { %379 = vmatpush.msrb.mxu3 %v161_v59  ;;  %399 = vmatpush.msra.mxu0 %v130_v7 }
  0x4d   :  { %419 = vmatpush.msra.mxu1 %v162_v61  ;;  %360 = vmatpush.msrb.mxu2 %v127_v8 }
  0x4e   :  { %380 = vmatpush.msrb.mxu3 %v159_v63  ;;  %400 = vmatpush.msra.mxu0 %v128_v9 }
  0x4f   :  { %420 = vmatpush.msra.mxu1 %v160_v1  ;;  %361 = vmatpush.msrb.mxu2 %v125_v10 }
  0x50   :  { %381 = vmatpush.msrb.mxu3 %v157_v3  ;;  %401 = vmatpush.msra.mxu0 %v126_v11 }
  0x51   :  { %421 = vmatpush.msra.mxu1 %v158_v5 }
  0x8d   :  { %v221_v44 = vpop.f32.mrf.mxu0 }
  0x8e   :  { %v241_v45 = vpop.f32.mrf.mxu1  ;;  %v222_v46 = vadd.f32 %v221_v44, %v196_v42 }
  0x8f   :  { %v242_v47 = vadd.f32 %v241_v45, %v197_v43 }
  0x90   :  { %v244_v48 = vmax.f32 %v222_v46, 0.0 }
  0x91   :  { %v245_v49 = vmax.f32 %v242_v47, 0.0 }
  0x92   :  { %267 = vmatmul.f32.vlgmr.msra.gmra.mxu2 %v244_v48  ;;  %307 = vmatmul.f32.vlgmr.msrb.gmra.mxu0 %v244_v48 }
  0x93   :  { %287 = vmatmul.f32.vlgmr.msra.gmra.mxu3 %v245_v49  ;;  %327 = vmatmul.f32.vlgmr.msrb.gmra.mxu1 %v245_v49 }
 0x10f   :  { %v308_v14 = vpop.f32.mrf.mxu0 }
 0x110   :  { %v309_v15 = vadd.f32 %v308_v14, %v248_v13  ;;  %v328_v16 = vpop.f32.mrf.mxu1 }
 0x112   :  { %v329_v17 = vadd.f32 %v328_v16, %v309_v15 }
 0x114   :  { %v332_v20 = vmax.f32 %v329_v17, 0.0 }
 0x115   :  { %v268_v21 = vpop.f32.mrf.mxu2 }
 0x116   :  { %v338_v22 = vmul.f32 1.6666666, %v332_v20  ;;  %v269_v23 = vadd.f32 %v268_v21, %v247_v18  ;;  %v288_v24 = vpop.f32.mrf.mxu3 }
 0x118   :  { %v289_v25 = vadd.f32 %v288_v24, %v269_v23  ;;  %449 = vmatmul.msk.f32.vlgmr.msrb.gmra.mxu3 %vm336_vm1, %v338_v22  ;;  %451 = vmatmul.msk.f32.vlgmr.msra.gmra.mxu1 %vm336_vm1, %v338_v22 }
 0x11a   :  { %v331_v27 = vmax.f32 %v289_v25, 0.0 }
 0x11c   :  { %v337_v28 = vmul.f32 1.6666666, %v331_v27 }
 0x11e   :  { %448 = vmatmul.msk.f32.vlgmr.msrb.gmra.mxu2 %vm335_vm2, %v337_v28  ;;  %450 = vmatmul.msk.f32.vlgmr.msra.gmra.mxu0 %vm335_vm2, %v337_v28 }
 0x195   :  { %v423_v33 = vpop.f32.mrf.mxu1 }
 0x19b   :  { %v403_v31 = vpop.f32.mrf.mxu0  ;;  %v383_v38 = vpop.f32.mrf.mxu3 }
 0x19c   :  { %v404_v32 = vadd.f32 %v403_v31, %v343_v30 }
 0x19e   :  { %v424_v34 = vadd.f32 %v423_v33, %v404_v32 }
 0x1a0   :  { %427 = vst [vmem:[#allocation8 + $0x8] sm:$0xff] %v424_v34 }
 0x1a1   :  { %v363_v36 = vpop.f32.mrf.mxu2 }
 0x1a2   :  { %v364_v37 = vadd.f32 %v363_v36, %v342_v35 }
 0x1a4   :  { %v384_v39 = vadd.f32 %v383_v38, %v364_v37 }
 0x1a6   :  { %426 = vst [vmem:[#allocation8] sm:$0xff] %v384_v39 }
 0x1a7   :  { %438 = dma.vmem_to_hbm [thread:$0]  %s434_s2, 256, %s436_s30, [#allocation4]  }
 0x1a8   :  { %558 = dma.done.wait [#allocation4], 256  }
 0x1a9   :  { %559 = vsyncadd [#allocation4], 4294967040 }
 0x1aa   :  { %443 = vsyncpa [#allocation3], 1 }
 0x1ab   :  { %444 = vsyncpa [#allocation6], 1 }
 0x1ac   :  { %445 = vsyncpa [#allocation4], 1 }

</bundles_post_ra>
